<compile_context>
chip_gen: v6e
topology: v6e:2x2x1
jax: 0.10.0
libtpu: 0.0.40
codegen_flags: <defaults>
</compile_context>

<pallas_src>
import jax
import jax.numpy as jnp
from jax.experimental import pallas as pl
from jax.experimental.pallas import tpu as pltpu

EPS = 1e-5  # nn.BatchNorm2d default eps


# -----------------------------------------------------------------------------
# Pass 1a (Cin >= 8): halo-tiled shifted matmul (bf16 MXU, f32 acc) + BN stats
# -----------------------------------------------------------------------------
def _conv_halo_stats_kernel(xblk_ref, wtaps_ref, z_ref, stats_ref):
    """xblk: (1, TR+2, W+2, Cin) bf16 halo row block   wtaps: (9, Cin, Cout) bf16
       z: (TR, W, Cout) bf16   stats: (1, 2, Cout) f32 per-block [sum, sum-of-sq]."""
    _, trp2, wp2, cin = xblk_ref.shape
    tr, w = trp2 - 2, wp2 - 2
    cout = wtaps_ref.shape[-1]
    x = xblk_ref[0]                                     # (TR+2, W+2, Cin)
    acc = jnp.zeros((tr * w, cout), jnp.float32)
    for kh in range(3):                                 # statically unrolled 9 taps
        for kw in range(3):
            tap = x[kh:kh + tr, kw:kw + w, :].reshape(tr * w, cin)
            acc = acc + jnp.dot(tap, wtaps_ref[kh * 3 + kw],
                                preferred_element_type=jnp.float32)
    z_ref[...] = acc.reshape(tr, w, cout).astype(z_ref.dtype)
    s = jnp.sum(acc, axis=0, keepdims=True)             # (1, Cout)
    ss = jnp.sum(acc * acc, axis=0, keepdims=True)      # (1, Cout) one-pass stats
    stats_ref[...] = jnp.concatenate([s, ss], axis=0)[None]


# -----------------------------------------------------------------------------
# Pass 1b (Cin == 1, first layer): tiny-K im2col matmul + BN stats
# -----------------------------------------------------------------------------
def _conv_im2col_stats_kernel(patches_ref, wmat_ref, z_ref, stats_ref):
    """patches: (TM, K) bf16   wmat: (K, Cout) bf16 (grid-resident)
       z: (TM, Cout) bf16      stats: (1, 2, Cout) f32."""
    z = jnp.dot(patches_ref[...], wmat_ref[...],
                preferred_element_type=jnp.float32)     # MXU, f32 accumulate
    z_ref[...] = z.astype(z_ref.dtype)
    s = jnp.sum(z, axis=0, keepdims=True)
    ss = jnp.sum(z * z, axis=0, keepdims=True)
    stats_ref[...] = jnp.concatenate([s, ss], axis=0)[None]


# -----------------------------------------------------------------------------
# Pass 2: folded BN affine + ReLU + in-register 2x2 max-pool, lane-dense output
# -----------------------------------------------------------------------------
def _bn_relu_pool_kernel(z_ref, scale_ref, shift_ref, out_ref):
    """z: (TR, W, Cout) bf16   scale/shift: (1, Cout) f32
       out: (TR//2, (W//2)*Cout) lane-dense pooled tile (bf16 or f32)."""
    tr, w, c = z_ref.shape
    trh, wp = tr // 2, w // 2
    # Single fused epilogue: y = max(z*scale + shift, 0)
    y = jnp.maximum(
        z_ref[...].astype(jnp.float32) * scale_ref[...] + shift_ref[...], 0.0)
    # 2x2 max-pool fully in-register.  The reshape form is kept (known-good lowering);
    # pass 2 is HBM-bound, so the cross-sublane relayout is free XLU filler.
    y = jnp.max(y.reshape(trh, 2, w, c), axis=1)       # pool row pairs    -> (trh, w, c)
    y = jnp.max(y.reshape(trh, wp, 2, c), axis=2)      # pool column pairs -> (trh, wp, c)
    out_ref[...] = y.reshape(trh, wp * c).astype(out_ref.dtype)   # lane-dense store


# -----------------------------------------------------------------------------
# Tiling helpers
# -----------------------------------------------------------------------------
def _largest_divisor(total, upper, quantum):
    """Largest divisor of `total` that is a multiple of `quantum` and <= upper.
    Falls back to `total` (a full-extent block is always legal)."""
    best = None
    c = quantum
    hi = min(upper, total)
    while c <= hi:
        if total % c == 0:
            best = c
        c += quantum
    return best if best is not None else total


def _conv_row_tile(H, W, row_target):
    """Largest divisor of H whose row block emits <= row_target output pixels."""
    best = 1
    for d in range(1, H + 1):
        if H % d == 0 and d * W <= row_target:
            best = d
    return best


def _pool_row_tile(NH, W, Cout, elem_budget=1 << 20):
    """Rows of z per pass-2 block: divides NH, keeps the block under elem_budget
    elements, and (unless full-extent) is a multiple of 32 so the pooled output
    block's sublane dim stays aligned for both f32 and bf16 stores."""
    if NH * W * Cout <= elem_budget:
        return NH
    best = None
    d = 32
    while d <= NH and d * W * Cout <= elem_budget:
        if NH % d == 0:
            best = d
        d += 32
    return best if best is not None else NH


# -----------------------------------------------------------------------------
# Conv_2d block wrapper (NHWC in -> NHWC out)
# -----------------------------------------------------------------------------
def conv2d_block(x_nhwc, w_oihw, conv_bias, bn_gamma, bn_beta, *,
                 row_target=2048, out_dtype=jnp.float32):
    """Conv_2d forward: Conv2d(3x3, s=1, p=1) -> BatchNorm2d (training-mode batch
    statistics) -> ReLU -> MaxPool2d(2).     (N, H, W, Cin) -> (N, H/2, W/2, Cout).

    row_target: target output pixels per pass-1 grid step (~2048 fits the default
    scoped VMEM on v5e/v6e/v7x; keep it large to amortize the ~0.35 us/step cost)."""
    # The conv bias is exactly cancelled by the training-mode BN mean subtraction,
    # so it is dropped (only valid with batch statistics, not running stats).
    del conv_bias
    N, H, W, Cin = x_nhwc.shape
    Cout, cin2, KH, KW = w_oihw.shape
    assert cin2 == Cin and KH == KW == 3
    assert H % 2 == 0 and W % 2 == 0, "MaxPool2d(2) requires even H and W"
    NH, Hp, Wp, P = N * H, H // 2, W // 2, N * H * W

    xb = x_nhwc.astype(jnp.bfloat16)
    xpad = jnp.pad(xb, ((0, 0), (1, 1), (1, 1), (0, 0)))

    if Cin >= 8:
        # ---- pass 1 (halo-tiled): nine shifted (tr*W, Cin)x(Cin, Cout) MXU dots --
        tr = _conv_row_tile(H, W, row_target)
        n_rb = H // tr
        NB = N * n_rb
        if n_rb == 1:
            x_blocks = xpad                               # (N, H+2, W+2, Cin)
        else:
            # Overlapping halo row blocks, materialized once (~2/tr extra rows).
            x_blocks = jnp.concatenate(
                [xpad[:, None, i * tr:i * tr + tr + 2] for i in range(n_rb)],
                axis=1).reshape(NB, tr + 2, W + 2, Cin)
        wtaps = jnp.transpose(w_oihw, (2, 3, 1, 0)).reshape(9, Cin, Cout)
        wtaps = wtaps.astype(jnp.bfloat16)
        z, stats = pl.pallas_call(
            _conv_halo_stats_kernel,
            grid=(NB,),
            in_specs=[
                pl.BlockSpec((1, tr + 2, W + 2, Cin), lambda i: (i, 0, 0, 0)),
                pl.BlockSpec((9, Cin, Cout), lambda i: (0, 0, 0)),   # resident weights
            ],
            out_specs=[
                pl.BlockSpec((tr, W, Cout), lambda i: (i, 0, 0)),
                pl.BlockSpec((1, 2, Cout), lambda i: (i, 0, 0)),
            ],
            out_shape=[
                jax.ShapeDtypeStruct((NH, W, Cout), jnp.bfloat16),   # bf16 inter-pass z
                jax.ShapeDtypeStruct((NB, 2, Cout), jnp.float32),
            ],
            compiler_params=pltpu.CompilerParams(
                dimension_semantics=("parallel",)),
        )(x_blocks, wtaps)
    else:
        # ---- pass 1 (Cin == 1 first layer): tiny-K im2col matmul -----------------
        # TODO(synk): a dedicated 9-tap VPU kernel would avoid the 9->128 lane pad;
        # layer 1 carries <5% of the model's HBM traffic so the matmul path is kept.
        Kdim = 9 * Cin
        cols = [xpad[:, kh:kh + H, kw:kw + W, :]
                for kh in range(3) for kw in range(3)]
        patches = jnp.stack(cols, axis=3).reshape(P, Kdim)          # bf16
        wmat = jnp.transpose(w_oihw, (2, 3, 1, 0)).reshape(Kdim, Cout)
        wmat = wmat.astype(jnp.bfloat16)
        tm = _largest_divisor(P, row_target, 16)                    # bf16 sublane quantum
        n_tiles = P // tm
        z_flat, stats = pl.pallas_call(
            _conv_im2col_stats_kernel,
            grid=(n_tiles,),
            in_specs=[
                pl.BlockSpec((tm, Kdim), lambda i: (i, 0)),
                pl.BlockSpec((Kdim, Cout), lambda i: (0, 0)),
            ],
            out_specs=[
                pl.BlockSpec((tm, Cout), lambda i: (i, 0)),
                pl.BlockSpec((1, 2, Cout), lambda i: (i, 0, 0)),
            ],
            out_shape=[
                jax.ShapeDtypeStruct((P, Cout), jnp.bfloat16),
                jax.ShapeDtypeStruct((n_tiles, 2, Cout), jnp.float32),
            ],
            compiler_params=pltpu.CompilerParams(
                dimension_semantics=("parallel",)),
        )(patches, wmat)
        z = z_flat.reshape(NH, W, Cout)

    # ---- finish BN stats (tiny XLA glue), fold affine into one scale / shift ----
    # One-pass E[z^2]-E[z]^2 in f32 is fine here (spec-BN-normalized inputs); switch
    # to per-tile mean-shifted sums if the stats ever look noisy.
    tot = jnp.sum(stats, axis=0)                                    # (2, Cout)
    mean = tot[0] / P
    var = tot[1] / P - mean * mean                                  # biased batch var
    scale = bn_gamma * jax.lax.rsqrt(var + EPS)
    shift = bn_beta - mean * scale

    # ---- pass 2: fused normalize + ReLU + 2x2 max-pool, lane-dense output --------
    tr2 = _pool_row_tile(NH, W, Cout)
    out2d = pl.pallas_call(
        _bn_relu_pool_kernel,
        grid=(NH // tr2,),
        in_specs=[
            pl.BlockSpec((tr2, W, Cout), lambda i: (i, 0, 0)),
            pl.BlockSpec((1, Cout), lambda i: (0, 0)),
            pl.BlockSpec((1, Cout), lambda i: (0, 0)),
        ],
        out_specs=pl.BlockSpec((tr2 // 2, Wp * Cout), lambda i: (i, 0)),
        out_shape=jax.ShapeDtypeStruct((N * Hp, Wp * Cout), out_dtype),
        compiler_params=pltpu.CompilerParams(
            dimension_semantics=("parallel",)),
    )(z, scale.reshape(1, Cout).astype(jnp.float32),
      shift.reshape(1, Cout).astype(jnp.float32))

    # Free leading/trailing-dim reshape back to NHWC (stays NHWC for the next block).
    return out2d.reshape(N, Hp, Wp, Cout)


# -----------------------------------------------------------------------------
# Pure-JAX references (conv operands rounded to bf16 exactly like the kernel path)
# -----------------------------------------------------------------------------
def _batchnorm2d_train_nhwc(y, gamma, beta):
    mean = y.mean(axis=(0, 1, 2), keepdims=True)
    var = ((y - mean) ** 2).mean(axis=(0, 1, 2), keepdims=True)
    return (y - mean) * jax.lax.rsqrt(var + EPS) * gamma.reshape(1, 1, 1, -1) \
        + beta.reshape(1, 1, 1, -1)


def reference_conv_block(x_nhwc, w, b, gamma, beta, *, row_target=2048,
                         out_dtype=jnp.float32):
    del row_target
    xb = x_nhwc.astype(jnp.bfloat16).astype(jnp.float32)
    wb = w.astype(jnp.bfloat16).astype(jnp.float32)
    y = jax.lax.conv_general_dilated(
        xb, wb, window_strides=(1, 1), padding="SAME",
        dimension_numbers=("NHWC", "OIHW", "NHWC"))
    y = y + b.reshape(1, 1, 1, -1)
    y = jnp.maximum(_batchnorm2d_train_nhwc(y, gamma, beta), 0.0)
    n, h, w_, c = y.shape
    y = y.reshape(n, h // 2, 2, w_ // 2, 2, c).max(axis=(2, 4))
    # Match the kernel path's inter-layer activation storage precision.
    return y.astype(out_dtype).astype(jnp.float32)


# -----------------------------------------------------------------------------
# FCN forward (from the spectrogram image onward), reused for kernel & reference
# -----------------------------------------------------------------------------
_FCN_CHANNELS = [(1, 64), (64, 128), (128, 128), (128, 128), (128, 64)]


def init_fcn_params(key, n_class=1):
    params = {"layers": []}
    key, kg, kb = jax.random.split(key, 3)
    params["spec_bn_gamma"] = 1.0 + 0.1 * jax.random.normal(kg, (1,), jnp.float32)
    params["spec_bn_beta"] = 0.1 * jax.random.normal(kb, (1,), jnp.float32)
    for cin, cout in _FCN_CHANNELS:
        key, kw, kb2, kg2, kb3 = jax.random.split(key, 5)
        params["layers"].append(dict(
            w=jax.random.normal(kw, (cout, cin, 3, 3), jnp.float32)
              * (2.0 / (9.0 * cin)) ** 0.5,
            b=0.1 * jax.random.normal(kb2, (cout,), jnp.float32),
            gamma=1.0 + 0.1 * jax.random.normal(kg2, (cout,), jnp.float32),
            beta=0.1 * jax.random.normal(kb3, (cout,), jnp.float32)))
    key, kfw, kfb = jax.random.split(key, 3)
    params["fc_w"] = 0.1 * jax.random.normal(kfw, (n_class, 128), jnp.float32)
    params["fc_b"] = 0.1 * jax.random.normal(kfb, (n_class,), jnp.float32)
    return params


def fcn_forward(spec_img, params, *, conv_block_fn):
    """FCN forward starting from the (dB mel-)spectrogram image (N, 1, n_mels, T).

    TODO(synk): the torchaudio MelSpectrogram + AmplitudeToDB front-end has no clean
    Pallas equivalent; the network is fed the spectrogram image directly.
    """
    # NCHW -> NHWC once (free for C == 1); everything downstream stays NHWC.
    x = jnp.transpose(spec_img, (0, 2, 3, 1))
    x = _batchnorm2d_train_nhwc(x, params["spec_bn_gamma"], params["spec_bn_beta"])
    n_layers = len(params["layers"])
    for idx, lp in enumerate(params["layers"]):
        # Intermediate activations stored bf16 (next layer feeds the MXU in bf16);
        # the last block emits f32 for the global mean/max pools.
        out_dtype = jnp.float32 if idx == n_layers - 1 else jnp.bfloat16
        x = conv_block_fn(x, lp["w"], lp["b"], lp["gamma"], lp["beta"],
                          out_dtype=out_dtype)
    x1 = jnp.mean(x, axis=(1, 2))            # AdaptiveAvgPool2d(1)
    x2 = jnp.max(x, axis=(1, 2))             # AdaptiveMaxPool2d(1)
    feat = jnp.concatenate([x1, x2], axis=1)
    # TODO(synk): Dropout(0.5) is identity (eval semantics); BatchNorm running-stat
    # buffer updates are not modeled.
    return feat @ params["fc_w"].T + params["fc_b"]


if __name__ == "__main__":
    key = jax.random.PRNGKey(0)

    # --- unit check A: Cin = 1 (im2col path, like FCN layer 1) -------------------
    N, H, W, Cout = 2, 16, 16, 8
    key, kx, kw, kb, kg, kbe = jax.random.split(key, 6)
    x1 = jax.random.normal(kx, (N, H, W, 1), jnp.float32)
    w1 = 0.3 * jax.random.normal(kw, (Cout, 1, 3, 3), jnp.float32)
    b1 = 0.1 * jax.random.normal(kb, (Cout,), jnp.float32)
    g1 = 1.0 + 0.1 * jax.random.normal(kg, (Cout,), jnp.float32)
    be1 = 0.1 * jax.random.normal(kbe, (Cout,), jnp.float32)
    outA = jax.block_until_ready(
        conv2d_block(x1, w1, b1, g1, be1, out_dtype=jnp.float32))
    refA = reference_conv_block(x1, w1, b1, g1, be1)
    assert outA.shape == (N, H // 2, W // 2, Cout), outA.shape
    assert jnp.allclose(outA, refA, rtol=1e-2, atol=1e-2), \
        float(jnp.max(jnp.abs(outA - refA)))

    # --- unit check B: Cin >= 8 (halo path); small row_target forces n_rb > 1 ----
    Cin, Cout2 = 8, 16
    key, kx2, kw2, kb2, kg2, kbe2 = jax.random.split(key, 6)
    x2 = jax.random.normal(kx2, (N, H, W, Cin), jnp.float32)
    w2 = 0.2 * jax.random.normal(kw2, (Cout2, Cin, 3, 3), jnp.float32)
    b2 = 0.1 * jax.random.normal(kb2, (Cout2,), jnp.float32)
    g2 = 1.0 + 0.1 * jax.random.normal(kg2, (Cout2,), jnp.float32)
    be2 = 0.1 * jax.random.normal(kbe2, (Cout2,), jnp.float32)
    outB = jax.block_until_ready(
        conv2d_block(x2, w2, b2, g2, be2, row_target=64, out_dtype=jnp.float32))
    refB = reference_conv_block(x2, w2, b2, g2, be2)
    assert outB.shape == (N, H // 2, W // 2, Cout2), outB.shape
    assert jnp.allclose(outB, refB, rtol=1e-2, atol=1e-2), \
        float(jnp.max(jnp.abs(outB - refB)))

    # --- full FCN forward: five Conv_2d Pallas blocks + tiny XLA glue -------------
    # Small spectrogram image: batch=2, 1 channel, 32 mel bins x 32 frames
    # (the real model uses n_mels=256; five 2x pools need spatial >= 32).
    key, kx3 = jax.random.split(key)
    spec_img = jax.random.normal(kx3, (2, 1, 32, 32), jnp.float32)
    params = init_fcn_params(jax.random.PRNGKey(1))

    out_fcn = jax.block_until_ready(
        fcn_forward(spec_img, params, conv_block_fn=conv2d_block))
    ref_fcn = fcn_forward(spec_img, params, conv_block_fn=reference_conv_block)
    assert out_fcn.shape == (2, 1), out_fcn.shape
    assert jnp.allclose(out_fcn, ref_fcn, rtol=5e-2, atol=5e-2), \
        float(jnp.max(jnp.abs(out_fcn - ref_fcn)))

    print("KERNEL_OK")
</pallas_src>

<mosaic_0001>
module attributes {stable_mosaic.version = 11 : i64} {
  func.func @_conv_im2col_stats_kernel(%arg0: i32, %arg1: memref<512x9xbf16, #tpu.memory_space<vmem>>, %arg2: memref<9x8xbf16, #tpu.memory_space<vmem>>, %arg3: memref<512x8xbf16, #tpu.memory_space<vmem>>, %arg4: memref<1x2x8xf32, #tpu.memory_space<vmem>>) attributes {dimension_semantics = [#tpu.dimension_semantics<parallel>], iteration_bounds = array<i64: 1>, scalar_prefetch = 0 : i64, scratch_operands = 0 : i64, tpu.core_type = #tpu.core_type<tc>, window_params = [{transform_indices = @transform_0, window_bounds = array<i64: 512, 9>}, {pipeline_mode = #tpu.pipeline_mode<synchronous>, transform_indices = @transform_1, window_bounds = array<i64: 9, 8>}, {transform_indices = @transform_2, window_bounds = array<i64: 512, 8>}, {transform_indices = @transform_3, window_bounds = array<i64: 1, 2, 8>}]} {
    %c0 = arith.constant 0 : index
    %c0_0 = arith.constant 0 : index
    %0 = vector.load %arg1[%c0, %c0_0] : memref<512x9xbf16, #tpu.memory_space<vmem>>, vector<512x9xbf16>
    %c0_1 = arith.constant 0 : index
    %c0_2 = arith.constant 0 : index
    %1 = vector.load %arg2[%c0_1, %c0_2] : memref<9x8xbf16, #tpu.memory_space<vmem>>, vector<9x8xbf16>
    %cst = arith.constant dense<0.000000e+00> : vector<512x8xf32>
    %2 = tpu.matmul %0, %1, %cst {dimension_numbers = #tpu.dot_dimension_numbers<[1], [0], [0], [1], [0, 0, 1, 1], [], []>} : vector<512x9xbf16>, vector<9x8xbf16>, vector<512x8xf32> -> vector<512x8xf32>
    %3 = arith.truncf %2 : vector<512x8xf32> to vector<512x8xbf16>
    %c0_3 = arith.constant 0 : index
    %c0_4 = arith.constant 0 : index
    %4 = vector.load %arg3[%c0_3, %c0_4] : memref<512x8xbf16, #tpu.memory_space<vmem>>, vector<512x8xbf16>
    tpu.vector_store %arg3[%c0_3, %c0_4], %3 {strides = array<i32>} : memref<512x8xbf16, #tpu.memory_space<vmem>>, vector<512x8xbf16>,
    %cst_5 = arith.constant dense<0.000000e+00> : vector<8xf32>
    %5 = vector.multi_reduction <add>, %2, %cst_5 [0] : vector<512x8xf32> to vector<8xf32>
    %6 = vector.shape_cast %5 : vector<8xf32> to vector<1x8xf32>
    %7 = arith.mulf %2, %2 : vector<512x8xf32>
    %cst_6 = arith.constant dense<0.000000e+00> : vector<8xf32>
    %8 = vector.multi_reduction <add>, %7, %cst_6 [0] : vector<512x8xf32> to vector<8xf32>
    %9 = vector.shape_cast %8 : vector<8xf32> to vector<1x8xf32>
    %10 = tpu.concatenate %6, %9 in 0 : vector<1x8xf32>, vector<1x8xf32> -> vector<2x8xf32>
    %11 = vector.shape_cast %10 : vector<2x8xf32> to vector<1x2x8xf32>
    %c0_7 = arith.constant 0 : index
    %c0_8 = arith.constant 0 : index
    %c0_9 = arith.constant 0 : index
    %12 = vector.load %arg4[%c0_7, %c0_8, %c0_9] : memref<1x2x8xf32, #tpu.memory_space<vmem>>, vector<1x2x8xf32>
    tpu.vector_store %arg4[%c0_7, %c0_8, %c0_9], %11 {strides = array<i32>} : memref<1x2x8xf32, #tpu.memory_space<vmem>>, vector<1x2x8xf32>,
    return
  }
  func.func @transform_0(%arg0: i32) -> (i32, i32) {
    %c0_i32 = arith.constant 0 : i32
    %c0_i32_0 = arith.constant 0 : i32
    return %arg0, %c0_i32 : i32, i32
  }
  func.func @transform_1(%arg0: i32) -> (i32, i32) {
    %c0_i32 = arith.constant 0 : i32
    %c0_i32_0 = arith.constant 0 : i32
    %c0_i32_1 = arith.constant 0 : i32
    return %c0_i32, %c0_i32_0 : i32, i32
  }
  func.func @transform_2(%arg0: i32) -> (i32, i32) {
    %c0_i32 = arith.constant 0 : i32
    %c0_i32_0 = arith.constant 0 : i32
    return %arg0, %c0_i32 : i32, i32
  }
  func.func @transform_3(%arg0: i32) -> (i32, i32, i32) {
    %c0_i32 = arith.constant 0 : i32
    %c0_i32_0 = arith.constant 0 : i32
    %c0_i32_1 = arith.constant 0 : i32
    return %arg0, %c0_i32, %c0_i32_0 : i32, i32, i32
  }
}

</mosaic_0001>

<bundles_post_ra>
// kernel: tpu_custom_call.1
= control target key start
LH: loop header
LB: loop body
LE: loop exit
PB: predicated region body
PF: predicated region fallthrough
CT: control target
= control target key end

     0   :  { %vm343_vm0 = vcmask 1043456   ;;  %vm344_vm1 = vcmask 1044480   ;;  %v1664_v2 = vmov 65535   ;;  %vm246_vm2 = vcmask 72704   ;;  %s2428_s0 = inlined_call_operand.vmem [shape: bf16[512,9], index: 0, kind: input, shape index: {}]   ;;  %s2429_s1 = inlined_call_operand.vmem [shape: bf16[9,8], index: 1, kind: input, shape index: {}]   ;;  %s2430_s2 = inlined_call_operand.vmem [shape: bf16[512,8], index: 2, kind: output, shape index: {0}]   ;;  %s2431_s3 = inlined_call_operand.hbm [shape: f32[1,2,8], index: 3, kind: output, shape index: {1}]  }
   0x1   :  { %v1609_v0 = vld [vmem:[%s2429_s1] sm:$0x1f]   ;;  %v345_v3 = vsel %vm343_vm0, 4294967295, %v1664_v2  ;;  %v1611_v6 = vld [vmem:[%s2428_s0 + $0x8] sm:$0xff]   ;;  %v1612_v7 = vld [vmem:[%s2428_s0 + $0x10] sm:$0xff]  }
   0x2   :  { %v1610_v1 = vld [vmem:[%s2428_s0] sm:$0xff]   ;;  %v346_v4 = vsel %vm344_vm1, %v345_v3, 0  ;;  %v1613_v8 = vld [vmem:[%s2428_s0 + $0x18] sm:$0xff]   ;;  %v1627_v11 = vld [vmem:[%s2428_s0 + $0x88] sm:$0xff]  }
   0x3   :  { %1541 = vmatprep.mubr.msk.bf16.mxu0 %vm246_vm2, %v1610_v1  ;;  %v348_v5 = vand.u32 %v1609_v0, %v346_v4  ;;  %v1614_v9 = vld [vmem:[%s2428_s0 + $0x20] sm:$0xff]   ;;  %v1628_v12 = vld [vmem:[%s2428_s0 + $0x90] sm:$0xff]   ;;  %v1615_v13 = vld [vmem:[%s2428_s0 + $0x28] sm:$0xff]  }
   0x4   :  { %v1626_v10 = vld [vmem:[%s2428_s0 + $0x80] sm:$0xff]   ;;  %v1616_v14 = vld [vmem:[%s2428_s0 + $0x30] sm:$0xff]   ;;  %v1629_v15 = vld [vmem:[%s2428_s0 + $0x98] sm:$0xff]  }
   0x5   :  { %1539 = vmatprep.subr.bf16.mxu0 %v348_v5  ;;  %1605 = vmatprep.subr.bf16.mxu1 %v348_v5  ;;  %v1630_v16 = vld [vmem:[%s2428_s0 + $0xa0] sm:$0xff]   ;;  %v1617_v17 = vld [vmem:[%s2428_s0 + $0x38] sm:$0xff]   ;;  %v1631_v19 = vld [vmem:[%s2428_s0 + $0xa8] sm:$0xff]  }
   0x6   :  { %1540 = vmatpush3.bf16.msra.mxu0 %v348_v5  ;;  %1606 = vmatpush3.bf16.msra.mxu1 %v348_v5  ;;  %v1618_v18 = vld [vmem:[%s2428_s0 + $0x40] sm:$0xff]  }
   0x7   :  { %1573 = vmatprep.mubr.msk.bf16.mxu1 %vm246_vm2, %v1626_v10 }
   0x9   :  { %1542 = vmatmul.mubr.msk.bf16.vlgmr.msra.gmra.mxu0 %vm246_vm2, %v1611_v6  ;;  %1574 = vmatmul.mubr.msk.bf16.vlgmr.msra.gmra.mxu1 %vm246_vm2, %v1627_v11 }
   0xa   :  { %1545 = vmatprep.mubr.msk.bf16.mxu0 %vm246_vm2, %v1612_v7  ;;  %1577 = vmatprep.mubr.msk.bf16.mxu1 %vm246_vm2, %v1628_v12 }
  0x11   :  { %1546 = vmatmul.mubr.msk.bf16.gmra.mxu0 %vm246_vm2, %v1613_v8  ;;  %1578 = vmatmul.mubr.msk.bf16.gmra.mxu1 %vm246_vm2, %v1629_v15 }
  0x12   :  { %1549 = vmatprep.mubr.msk.bf16.mxu0 %vm246_vm2, %v1614_v9  ;;  %1581 = vmatprep.mubr.msk.bf16.mxu1 %vm246_vm2, %v1630_v16 }
  0x19   :  { %1550 = vmatmul.mubr.msk.bf16.gmra.mxu0 %vm246_vm2, %v1615_v13 }
  0x1a   :  { %1553 = vmatprep.mubr.msk.bf16.mxu0 %vm246_vm2, %v1616_v14 }
  0x1b   :  { %9 = vsyncpa [#allocation3], 0  ;;  %v1632_v20 = vld [vmem:[%s2428_s0 + $0xb0] sm:$0xff]   ;;  %1582 = vmatmul.mubr.msk.bf16.gmra.mxu1 %vm246_vm2, %v1631_v19  ;;  %v1619_v21 = vld [vmem:[%s2428_s0 + $0x48] sm:$0xff]   ;;  %vm895_vm3 = vcmask 60416   ;;  %vm960_vm4 = vcmask 64512  }
  0x1c   :  { %1585 = vmatprep.mubr.msk.bf16.mxu1 %vm246_vm2, %v1632_v20  ;;  %v1620_v22 = vld [vmem:[%s2428_s0 + $0x50] sm:$0xff]   ;;  %v1633_v23 = vld [vmem:[%s2428_s0 + $0xb8] sm:$0xff]   ;;  %v1634_v24 = vld [vmem:[%s2428_s0 + $0xc0] sm:$0xff]   ;;  %vm1291_vm5 = vcmask 1040384   ;;  %vm1293_vm6 = vcmask 58368  }
  0x1d   :  { %v1621_v25 = vld [vmem:[%s2428_s0 + $0x58] sm:$0xff]   ;;  %v1622_v26 = vld [vmem:[%s2428_s0 + $0x60] sm:$0xff]   ;;  %v1635_v27 = vld [vmem:[%s2428_s0 + $0xc8] sm:$0xff]  }
  0x1e   :  { %v1636_v28 = vld [vmem:[%s2428_s0 + $0xd0] sm:$0xff]   ;;  %v1623_v29 = vld [vmem:[%s2428_s0 + $0x68] sm:$0xff]   ;;  %v1637_v31 = vld [vmem:[%s2428_s0 + $0xd8] sm:$0xff]  }
  0x1f   :  { %v1624_v30 = vld [vmem:[%s2428_s0 + $0x70] sm:$0xff]   ;;  %v1638_v32 = vld [vmem:[%s2428_s0 + $0xe0] sm:$0xff]   ;;  %v1625_v33 = vld [vmem:[%s2428_s0 + $0x78] sm:$0xff]  }
  0x20   :  { %v1639_v34 = vld [vmem:[%s2428_s0 + $0xe8] sm:$0xff]   ;;  %v1640_v35 = vld [vmem:[%s2428_s0 + $0xf0] sm:$0xff]   ;;  %v1641_v36 = vld [vmem:[%s2428_s0 + $0xf8] sm:$0xff]  }
  0x21   :  { %1554 = vmatmul.mubr.msk.bf16.gmra.mxu0 %vm246_vm2, %v1617_v17 }
  0x22   :  { %1557 = vmatprep.mubr.msk.bf16.mxu0 %vm246_vm2, %v1618_v18 }
  0x23   :  { %1586 = vmatmul.mubr.msk.bf16.gmra.mxu1 %vm246_vm2, %v1633_v23 }
  0x24   :  { %1589 = vmatprep.mubr.msk.bf16.mxu1 %vm246_vm2, %v1634_v24 }
  0x29   :  { %1558 = vmatmul.mubr.msk.bf16.gmra.mxu0 %vm246_vm2, %v1619_v21 }
  0x2a   :  { %1561 = vmatprep.mubr.msk.bf16.mxu0 %vm246_vm2, %v1620_v22 }
  0x2b   :  { %1590 = vmatmul.mubr.msk.bf16.gmra.mxu1 %vm246_vm2, %v1635_v27 }
  0x2c   :  { %1593 = vmatprep.mubr.msk.bf16.mxu1 %vm246_vm2, %v1636_v28 }
  0x31   :  { %1562 = vmatmul.mubr.msk.bf16.gmra.mxu0 %vm246_vm2, %v1621_v25 }
  0x32   :  { %1565 = vmatprep.mubr.msk.bf16.mxu0 %vm246_vm2, %v1622_v26 }
  0x33   :  { %1594 = vmatmul.mubr.msk.bf16.gmra.mxu1 %vm246_vm2, %v1637_v31 }
  0x34   :  { %1597 = vmatprep.mubr.msk.bf16.mxu1 %vm246_vm2, %v1638_v32 }
  0x39   :  { %1566 = vmatmul.mubr.msk.bf16.gmra.mxu0 %vm246_vm2, %v1623_v29 }
  0x3a   :  { %1569 = vmatprep.mubr.msk.bf16.mxu0 %vm246_vm2, %v1624_v30 }
  0x3b   :  { %1598 = vmatmul.mubr.msk.bf16.gmra.mxu1 %vm246_vm2, %v1639_v34 }
  0x3c   :  { %1601 = vmatprep.mubr.msk.bf16.mxu1 %vm246_vm2, %v1640_v35 }
  0x41   :  { %1570 = vmatmul.mubr.msk.bf16.gmra.mxu0 %vm246_vm2, %v1625_v33 }
  0x43   :  { %1602 = vmatmul.mubr.msk.bf16.gmra.mxu1 %vm246_vm2, %v1641_v36 }
  0xc9   :  { %v1543_v37 = vpop.f32.mrf.mxu0  ;;  %v1844_v0 = vpop.f32.mrf.mxu1 }
  0xca   :  { %v1444_v38 = vpack.c.bf16 %v1543_v37, %v1543_v37  ;;  %v1096_v44 = vmul.f32 %v1543_v37, %v1543_v37  ;;  %v964_v50 = vsel %vm960_vm4, %v1543_v37, 0.0  ;;  %v1476_v4 = vpack.c.bf16 %v1844_v0, %v1844_v0 }
  0xcb   :  { %v384_v39 = vpop.f32.mrf.mxu0  ;;  %v1854_v8 = vpop.f32.mrf.mxu1 }
  0xcc   :  { %898 = vst.msk [vmem:[%s2430_s2 + $0x8] sm:$0xf] %vm895_vm3, %v1444_v38  ;;  %v1442_v40 = vpack.c.bf16 %v384_v39, %v384_v39  ;;  %v1094_v42 = vmul.f32 %v384_v39, %v384_v39  ;;  %v961_v46 = vsel %vm960_vm4, %v384_v39, 0.0  ;;  %v1161_v60 = vsel %vm960_vm4, %v1096_v44, 0.0  ;;  %930 = vst.msk [vmem:[%s2430_s2 + $0x88] sm:$0xf] %vm895_vm3, %v1476_v4 }
  0xcd   :  { %v1544_v41 = vpop.f32.mrf.mxu0  ;;  %v1474_v13 = vpack.c.bf16 %v1854_v8, %v1854_v8  ;;  %v1868_v18 = vpop.f32.mrf.mxu1 }
  0xce   :  { %896 = vst.msk [vmem:[%s2430_s2] sm:$0xf] %vm895_vm3, %v1442_v40  ;;  %v1445_v43 = vpack.c.bf16 %v1544_v41, %v1544_v41  ;;  %v1158_v53 = vsel %vm960_vm4, %v1094_v42, 0.0  ;;  %v1097_v54 = vmul.f32 %v1544_v41, %v1544_v41  ;;  %v966_v61 = vsel %vm960_vm4, %v1544_v41, 0.0 }
  0xcf   :  { %v387_v45 = vpop.f32.mrf.mxu0  ;;  %928 = vst.msk [vmem:[%s2430_s2 + $0x80] sm:$0xf] %vm895_vm3, %v1474_v13  ;;  %v1880_v26 = vpop.f32.mrf.mxu1  ;;  %v1477_v30 = vpack.c.bf16 %v1868_v18, %v1868_v18 }
  0xd0   :  { %899 = vst.msk [vmem:[%s2430_s2 + $0xc] sm:$0xf] %vm895_vm3, %v1445_v43  ;;  %v1443_v47 = vpack.c.bf16 %v387_v45, %v387_v45  ;;  %v962_v48 = vsel %vm960_vm4, %v387_v45, 0.0  ;;  %v1095_v49 = vmul.f32 %v387_v45, %v387_v45  ;;  %v1163_v5 = vsel %vm960_vm4, %v1097_v54, 0.0 }
  0xd1   :  { %v963_v51 = vadd.f32 %v962_v48, %v961_v46  ;;  %v1547_v52 = vpop.f32.mrf.mxu0  ;;  %v1890_v35 = vpop.f32.mrf.mxu1  ;;  %931 = vst.msk [vmem:[%s2430_s2 + $0x8c] sm:$0xf] %vm895_vm3, %v1477_v30 }
  0xd2   :  { %897 = vst.msk [vmem:[%s2430_s2 + $0x4] sm:$0xf] %vm895_vm3, %v1443_v47  ;;  %v1159_v55 = vsel %vm960_vm4, %v1095_v49, 0.0  ;;  %v1448_v56 = vpack.c.bf16 %v1547_v52, %v1547_v52  ;;  %v1100_v9 = vmul.f32 %v1547_v52, %v1547_v52  ;;  %v972_v22 = vsel %vm960_vm4, %v1547_v52, 0.0 }
  0xd3   :  { %v965_v57 = vadd.f32 %v964_v50, %v963_v51  ;;  %v1160_v58 = vadd.f32 %v1159_v55, %v1158_v53  ;;  %v400_v59 = vpop.f32.mrf.mxu0  ;;  %v1902_v42 = vpop.f32.mrf.mxu1  ;;  %v1475_v47 = vpack.c.bf16 %v1880_v26, %v1880_v26 }
  0xd4   :  { %902 = vst.msk [vmem:[%s2430_s2 + $0x18] sm:$0xf] %vm895_vm3, %v1448_v56  ;;  %v1446_v62 = vpack.c.bf16 %v400_v59, %v400_v59  ;;  %v1098_v63 = vmul.f32 %v400_v59, %v400_v59  ;;  %v968_v6 = vsel %vm960_vm4, %v400_v59, 0.0  ;;  %v1169_v31 = vsel %vm960_vm4, %v1100_v9, 0.0 }
  0xd5   :  { %v1162_v1 = vadd.f32 %v1161_v60, %v1160_v58  ;;  %v967_v2 = vadd.f32 %v966_v61, %v965_v57  ;;  %v1548_v3 = vpop.f32.mrf.mxu0  ;;  %v1912_v52 = vpop.f32.mrf.mxu1  ;;  %929 = vst.msk [vmem:[%s2430_s2 + $0x84] sm:$0xf] %vm895_vm3, %v1475_v47 }
  0xd6   :  { %900 = vst.msk [vmem:[%s2430_s2 + $0x10] sm:$0xf] %vm895_vm3, %v1446_v62  ;;  %v1449_v7 = vpack.c.bf16 %v1548_v3, %v1548_v3  ;;  %v1165_v14 = vsel %vm960_vm4, %v1098_v63, 0.0  ;;  %v1101_v23 = vmul.f32 %v1548_v3, %v1548_v3  ;;  %v974_v32 = vsel %vm960_vm4, %v1548_v3, 0.0 }
  0xd7   :  { %v969_v10 = vadd.f32 %v968_v6, %v967_v2  ;;  %v1164_v11 = vadd.f32 %v1163_v5, %v1162_v1  ;;  %v403_v12 = vpop.f32.mrf.mxu0  ;;  %v1924_v60 = vpop.f32.mrf.mxu1  ;;  %v1480_v1 = vpack.c.bf16 %v1890_v35, %v1890_v35 }
  0xd8   :  { %903 = vst.msk [vmem:[%s2430_s2 + $0x1c] sm:$0xf] %vm895_vm3, %v1449_v7  ;;  %v1447_v15 = vpack.c.bf16 %v403_v12, %v403_v12  ;;  %v970_v16 = vsel %vm960_vm4, %v403_v12, 0.0  ;;  %v1099_v17 = vmul.f32 %v403_v12, %v403_v12  ;;  %v1171_v39 = vsel %vm960_vm4, %v1101_v23, 0.0 }
  0xd9   :  { %v1166_v19 = vadd.f32 %v1165_v14, %v1164_v11  ;;  %v971_v20 = vadd.f32 %v970_v16, %v969_v10  ;;  %v1551_v21 = vpop.f32.mrf.mxu0  ;;  %934 = vst.msk [vmem:[%s2430_s2 + $0x98] sm:$0xf] %vm895_vm3, %v1480_v1 }
  0xda   :  { %901 = vst.msk [vmem:[%s2430_s2 + $0x14] sm:$0xf] %vm895_vm3, %v1447_v15  ;;  %v1167_v24 = vsel %vm960_vm4, %v1099_v17, 0.0  ;;  %v1452_v25 = vpack.c.bf16 %v1551_v21, %v1551_v21  ;;  %v1104_v43 = vmul.f32 %v1551_v21, %v1551_v21  ;;  %v980_v56 = vsel %vm960_vm4, %v1551_v21, 0.0 }
  0xdb   :  { %v973_v27 = vadd.f32 %v972_v22, %v971_v20  ;;  %v1168_v28 = vadd.f32 %v1167_v24, %v1166_v19  ;;  %v416_v29 = vpop.f32.mrf.mxu0  ;;  %v1934_v6 = vpop.f32.mrf.mxu1  ;;  %v1478_v20 = vpack.c.bf16 %v1902_v42, %v1902_v42 }
  0xdc   :  { %906 = vst.msk [vmem:[%s2430_s2 + $0x28] sm:$0xf] %vm895_vm3, %v1452_v25  ;;  %v1450_v33 = vpack.c.bf16 %v416_v29, %v416_v29  ;;  %v1102_v34 = vmul.f32 %v416_v29, %v416_v29  ;;  %v976_v40 = vsel %vm960_vm4, %v416_v29, 0.0  ;;  %v1177_v2 = vsel %vm960_vm4, %v1104_v43, 0.0 }
  0xdd   :  { %v1170_v36 = vadd.f32 %v1169_v31, %v1168_v28  ;;  %v975_v37 = vadd.f32 %v974_v32, %v973_v27  ;;  %v1552_v38 = vpop.f32.mrf.mxu0  ;;  %v1946_v14 = vpop.f32.mrf.mxu1  ;;  %932 = vst.msk [vmem:[%s2430_s2 + $0x90] sm:$0xf] %vm895_vm3, %v1478_v20 }
  0xde   :  { %904 = vst.msk [vmem:[%s2430_s2 + $0x20] sm:$0xf] %vm895_vm3, %v1450_v33  ;;  %v1453_v41 = vpack.c.bf16 %v1552_v38, %v1552_v38  ;;  %v1173_v48 = vsel %vm960_vm4, %v1102_v34, 0.0  ;;  %v1105_v57 = vmul.f32 %v1552_v38, %v1552_v38  ;;  %v982_v3 = vsel %vm960_vm4, %v1552_v38, 0.0 }
  0xdf   :  { %v977_v44 = vadd.f32 %v976_v40, %v975_v37  ;;  %v1172_v45 = vadd.f32 %v1171_v39, %v1170_v36  ;;  %v419_v46 = vpop.f32.mrf.mxu0  ;;  %v1956_v25 = vpop.f32.mrf.mxu1  ;;  %v1481_v39 = vpack.c.bf16 %v1912_v52, %v1912_v52 }
  0xe0   :  { %907 = vst.msk [vmem:[%s2430_s2 + $0x2c] sm:$0xf] %vm895_vm3, %v1453_v41  ;;  %v1451_v49 = vpack.c.bf16 %v419_v46, %v419_v46  ;;  %v978_v50 = vsel %vm960_vm4, %v419_v46, 0.0  ;;  %v1103_v51 = vmul.f32 %v419_v46, %v419_v46  ;;  %v1179_v11 = vsel %vm960_vm4, %v1105_v57, 0.0 }
  0xe1   :  { %v1174_v53 = vadd.f32 %v1173_v48, %v1172_v45  ;;  %v979_v54 = vadd.f32 %v978_v50, %v977_v44  ;;  %v1555_v55 = vpop.f32.mrf.mxu0  ;;  %v1968_v34 = vpop.f32.mrf.mxu1  ;;  %935 = vst.msk [vmem:[%s2430_s2 + $0x9c] sm:$0xf] %vm895_vm3, %v1481_v39 }
  0xe2   :  { %905 = vst.msk [vmem:[%s2430_s2 + $0x24] sm:$0xf] %vm895_vm3, %v1451_v49  ;;  %v1175_v58 = vsel %vm960_vm4, %v1103_v51, 0.0  ;;  %v1456_v59 = vpack.c.bf16 %v1555_v55, %v1555_v55  ;;  %v1108_v15 = vmul.f32 %v1555_v55, %v1555_v55  ;;  %v988_v30 = vsel %vm960_vm4, %v1555_v55, 0.0 }
  0xe3   :  { %v981_v61 = vadd.f32 %v980_v56, %v979_v54  ;;  %v1176_v62 = vadd.f32 %v1175_v58, %v1174_v53  ;;  %v432_v63 = vpop.f32.mrf.mxu0  ;;  %v1978_v45 = vpop.f32.mrf.mxu1  ;;  %v1479_v58 = vpack.c.bf16 %v1924_v60, %v1924_v60 }
  0xe4   :  { %910 = vst.msk [vmem:[%s2430_s2 + $0x38] sm:$0xf] %vm895_vm3, %v1456_v59  ;;  %v1454_v4 = vpack.c.bf16 %v432_v63, %v432_v63  ;;  %v1106_v5 = vmul.f32 %v432_v63, %v432_v63  ;;  %v984_v12 = vsel %vm960_vm4, %v432_v63, 0.0  ;;  %v1185_v40 = vsel %vm960_vm4, %v1108_v15, 0.0 }
  0xe5   :  { %v1178_v7 = vadd.f32 %v1177_v2, %v1176_v62  ;;  %v983_v9 = vadd.f32 %v982_v3, %v981_v61  ;;  %v1556_v10 = vpop.f32.mrf.mxu0  ;;  %v1990_v53 = vpop.f32.mrf.mxu1  ;;  %933 = vst.msk [vmem:[%s2430_s2 + $0x94] sm:$0xf] %vm895_vm3, %v1479_v58 }
  0xe6   :  { %908 = vst.msk [vmem:[%s2430_s2 + $0x30] sm:$0xf] %vm895_vm3, %v1454_v4  ;;  %v1457_v13 = vpack.c.bf16 %v1556_v10, %v1556_v10  ;;  %v1181_v21 = vsel %vm960_vm4, %v1106_v5, 0.0  ;;  %v1109_v31 = vmul.f32 %v1556_v10, %v1556_v10  ;;  %v990_v41 = vsel %vm960_vm4, %v1556_v10, 0.0 }
  0xe7   :  { %v985_v16 = vadd.f32 %v984_v12, %v983_v9  ;;  %v1180_v17 = vadd.f32 %v1179_v11, %v1178_v7  ;;  %v435_v19 = vpop.f32.mrf.mxu0  ;;  %v2000_v1 = vpop.f32.mrf.mxu1 }
  0xe8   :  { %911 = vst.msk [vmem:[%s2430_s2 + $0x3c] sm:$0xf] %vm895_vm3, %v1457_v13  ;;  %v1455_v22 = vpack.c.bf16 %v435_v19, %v435_v19  ;;  %v986_v23 = vsel %vm960_vm4, %v435_v19, 0.0  ;;  %v1107_v24 = vmul.f32 %v435_v19, %v435_v19  ;;  %v1187_v49 = vsel %vm960_vm4, %v1109_v31, 0.0 }
  0xe9   :  { %v1182_v27 = vadd.f32 %v1181_v21, %v1180_v17  ;;  %v987_v28 = vadd.f32 %v986_v23, %v985_v16  ;;  %v1559_v29 = vpop.f32.mrf.mxu0  ;;  %v2012_v11 = vpop.f32.mrf.mxu1  ;;  %v1484_v16 = vpack.c.bf16 %v1934_v6, %v1934_v6 }
  0xea   :  { %909 = vst.msk [vmem:[%s2430_s2 + $0x34] sm:$0xf] %vm895_vm3, %v1455_v22  ;;  %v1183_v32 = vsel %vm960_vm4, %v1107_v24, 0.0  ;;  %v1460_v33 = vpack.c.bf16 %v1559_v29, %v1559_v29  ;;  %v1112_v54 = vmul.f32 %v1559_v29, %v1559_v29  ;;  %v996_v5 = vsel %vm960_vm4, %v1559_v29, 0.0 }
  0xeb   :  { %v989_v36 = vadd.f32 %v988_v30, %v987_v28  ;;  %v1184_v37 = vadd.f32 %v1183_v32, %v1182_v27  ;;  %v448_v38 = vpop.f32.mrf.mxu0  ;;  %v2022_v22 = vpop.f32.mrf.mxu1  ;;  %938 = vst.msk [vmem:[%s2430_s2 + $0xa8] sm:$0xf] %vm895_vm3, %v1484_v16 }
  0xec   :  { %914 = vst.msk [vmem:[%s2430_s2 + $0x48] sm:$0xf] %vm895_vm3, %v1460_v33  ;;  %v1458_v43 = vpack.c.bf16 %v448_v38, %v448_v38  ;;  %v1110_v44 = vmul.f32 %v448_v38, %v448_v38  ;;  %v992_v50 = vsel %vm960_vm4, %v448_v38, 0.0  ;;  %v1193_v17 = vsel %vm960_vm4, %v1112_v54, 0.0 }
  0xed   :  { %v1186_v46 = vadd.f32 %v1185_v40, %v1184_v37  ;;  %v991_v47 = vadd.f32 %v990_v41, %v989_v36  ;;  %v1560_v48 = vpop.f32.mrf.mxu0  ;;  %v2034_v31 = vpop.f32.mrf.mxu1  ;;  %v1482_v38 = vpack.c.bf16 %v1946_v14, %v1946_v14 }
  0xee   :  { %912 = vst.msk [vmem:[%s2430_s2 + $0x40] sm:$0xf] %vm895_vm3, %v1458_v43  ;;  %v1461_v51 = vpack.c.bf16 %v1560_v48, %v1560_v48  ;;  %v1189_v59 = vsel %vm960_vm4, %v1110_v44, 0.0  ;;  %v1113_v7 = vmul.f32 %v1560_v48, %v1560_v48  ;;  %v998_v19 = vsel %vm960_vm4, %v1560_v48, 0.0 }
  0xef   :  { %v993_v55 = vadd.f32 %v992_v50, %v991_v47  ;;  %v1188_v56 = vadd.f32 %v1187_v49, %v1186_v46  ;;  %v451_v57 = vpop.f32.mrf.mxu0  ;;  %v2044_v44 = vpop.f32.mrf.mxu1  ;;  %936 = vst.msk [vmem:[%s2430_s2 + $0xa0] sm:$0xf] %vm895_vm3, %v1482_v38 }
  0xf0   :  { %915 = vst.msk [vmem:[%s2430_s2 + $0x4c] sm:$0xf] %vm895_vm3, %v1461_v51  ;;  %v1459_v61 = vpack.c.bf16 %v451_v57, %v451_v57  ;;  %v994_v62 = vsel %vm960_vm4, %v451_v57, 0.0  ;;  %v1111_v63 = vmul.f32 %v451_v57, %v451_v57  ;;  %v1195_v28 = vsel %vm960_vm4, %v1113_v7, 0.0 }
  0xf1   :  { %v1190_v2 = vadd.f32 %v1189_v59, %v1188_v56  ;;  %v995_v3 = vadd.f32 %v994_v62, %v993_v55  ;;  %v1563_v4 = vpop.f32.mrf.mxu0  ;;  %v2056_v55 = vpop.f32.mrf.mxu1  ;;  %v1485_v59 = vpack.c.bf16 %v1956_v25, %v1956_v25 }
  0xf2   :  { %913 = vst.msk [vmem:[%s2430_s2 + $0x44] sm:$0xf] %vm895_vm3, %v1459_v61  ;;  %v1191_v9 = vsel %vm960_vm4, %v1111_v63, 0.0  ;;  %v1464_v10 = vpack.c.bf16 %v1563_v4, %v1563_v4  ;;  %v1116_v32 = vmul.f32 %v1563_v4, %v1563_v4  ;;  %v1004_v49 = vsel %vm960_vm4, %v1563_v4, 0.0 }
  0xf3   :  { %v997_v12 = vadd.f32 %v996_v5, %v995_v3  ;;  %v1192_v13 = vadd.f32 %v1191_v9, %v1190_v2  ;;  %v464_v15 = vpop.f32.mrf.mxu0  ;;  %v2066_v3 = vpop.f32.mrf.mxu1  ;;  %939 = vst.msk [vmem:[%s2430_s2 + $0xac] sm:$0xf] %vm895_vm3, %v1485_v59 }
  0xf4   :  { %918 = vst.msk [vmem:[%s2430_s2 + $0x58] sm:$0xf] %vm895_vm3, %v1464_v10  ;;  %v1462_v20 = vpack.c.bf16 %v464_v15, %v464_v15  ;;  %v1114_v21 = vmul.f32 %v464_v15, %v464_v15  ;;  %v1000_v29 = vsel %vm960_vm4, %v464_v15, 0.0  ;;  %v1201_v61 = vsel %vm960_vm4, %v1116_v32, 0.0 }
  0xf5   :  { %v1194_v23 = vadd.f32 %v1193_v17, %v1192_v13  ;;  %v999_v24 = vadd.f32 %v998_v19, %v997_v12  ;;  %v1564_v27 = vpop.f32.mrf.mxu0  ;;  %v2078_v13 = vpop.f32.mrf.mxu1 }
  0xf6   :  { %916 = vst.msk [vmem:[%s2430_s2 + $0x50] sm:$0xf] %vm895_vm3, %v1462_v20  ;;  %v1465_v30 = vpack.c.bf16 %v1564_v27, %v1564_v27  ;;  %v1197_v39 = vsel %vm960_vm4, %v1114_v21, 0.0  ;;  %v1117_v50 = vmul.f32 %v1564_v27, %v1564_v27  ;;  %v1006_v62 = vsel %vm960_vm4, %v1564_v27, 0.0 }
  0xf7   :  { %v1001_v33 = vadd.f32 %v1000_v29, %v999_v24  ;;  %v1196_v36 = vadd.f32 %v1195_v28, %v1194_v23  ;;  %v467_v37 = vpop.f32.mrf.mxu0  ;;  %v1483_v20 = vpack.c.bf16 %v1968_v34, %v1968_v34  ;;  %v2088_v28 = vpop.f32.mrf.mxu1 }
  0xf8   :  { %919 = vst.msk [vmem:[%s2430_s2 + $0x5c] sm:$0xf] %vm895_vm3, %v1465_v30  ;;  %v1463_v40 = vpack.c.bf16 %v467_v37, %v467_v37  ;;  %v1002_v41 = vsel %vm960_vm4, %v467_v37, 0.0  ;;  %v1115_v43 = vmul.f32 %v467_v37, %v467_v37  ;;  %v1203_v9 = vsel %vm960_vm4, %v1117_v50, 0.0 }
  0xf9   :  { %v1198_v46 = vadd.f32 %v1197_v39, %v1196_v36  ;;  %v1003_v47 = vadd.f32 %v1002_v41, %v1001_v33  ;;  %v1567_v48 = vpop.f32.mrf.mxu0  ;;  %937 = vst.msk [vmem:[%s2430_s2 + $0xa4] sm:$0xf] %vm895_vm3, %v1483_v20  ;;  %v2100_v39 = vpop.f32.mrf.mxu1 }
  0xfa   :  { %917 = vst.msk [vmem:[%s2430_s2 + $0x54] sm:$0xf] %vm895_vm3, %v1463_v40  ;;  %v1199_v51 = vsel %vm960_vm4, %v1115_v43, 0.0  ;;  %v1468_v54 = vpack.c.bf16 %v1567_v48, %v1567_v48  ;;  %v1120_v15 = vmul.f32 %v1567_v48, %v1567_v48  ;;  %v1012_v33 = vsel %vm960_vm4, %v1567_v48, 0.0 }
  0xfb   :  { %v1005_v56 = vadd.f32 %v1004_v49, %v1003_v47  ;;  %v1200_v57 = vadd.f32 %v1199_v51, %v1198_v46  ;;  %v480_v58 = vpop.f32.mrf.mxu0  ;;  %v1488_v46 = vpack.c.bf16 %v1978_v45, %v1978_v45  ;;  %v2110_v51 = vpop.f32.mrf.mxu1 }
  0xfc   :  { %922 = vst.msk [vmem:[%s2430_s2 + $0x68] sm:$0xf] %vm895_vm3, %v1468_v54  ;;  %v1466_v63 = vpack.c.bf16 %v480_v58, %v480_v58  ;;  %v1118_v2 = vmul.f32 %v480_v58, %v480_v58  ;;  %v1008_v10 = vsel %vm960_vm4, %v480_v58, 0.0  ;;  %v1209_v47 = vsel %vm960_vm4, %v1120_v15, 0.0 }
  0xfd   :  { %v1202_v4 = vadd.f32 %v1201_v61, %v1200_v57  ;;  %v1007_v5 = vadd.f32 %v1006_v62, %v1005_v56  ;;  %v1568_v7 = vpop.f32.mrf.mxu0  ;;  %942 = vst.msk [vmem:[%s2430_s2 + $0xb8] sm:$0xf] %vm895_vm3, %v1488_v46  ;;  %v2122_v62 = vpop.f32.mrf.mxu1  ;;  %v1024_v46 = vsel %vm960_vm4, %v1854_v8, 0.0 }
  0xfe   :  { %920 = vst.msk [vmem:[%s2430_s2 + $0x60] sm:$0xf] %vm895_vm3, %v1466_v63  ;;  %v1469_v12 = vpack.c.bf16 %v1568_v7, %v1568_v7  ;;  %v1205_v21 = vsel %vm960_vm4, %v1118_v2, 0.0  ;;  %v1121_v36 = vmul.f32 %v1568_v7, %v1568_v7  ;;  %v1014_v48 = vsel %vm960_vm4, %v1568_v7, 0.0 }
  0xff   :  { %v1009_v16 = vadd.f32 %v1008_v10, %v1007_v5  ;;  %v1204_v17 = vadd.f32 %v1203_v9, %v1202_v4  ;;  %v483_v19 = vpop.f32.mrf.mxu0  ;;  %v1486_v7 = vpack.c.bf16 %v1990_v53, %v1990_v53 }
 0x100   :  { %923 = vst.msk [vmem:[%s2430_s2 + $0x6c] sm:$0xf] %vm895_vm3, %v1469_v12  ;;  %v1467_v23 = vpack.c.bf16 %v483_v19, %v483_v19  ;;  %v1010_v24 = vsel %vm960_vm4, %v483_v19, 0.0  ;;  %v1119_v27 = vmul.f32 %v483_v19, %v483_v19  ;;  %v1211_v58 = vsel %vm960_vm4, %v1121_v36, 0.0  ;;  %v2136_v19 = vpop.f32.mrf.mxu1 }
 0x101   :  { %v1206_v29 = vadd.f32 %v1205_v21, %v1204_v17  ;;  %v1011_v30 = vadd.f32 %v1010_v24, %v1009_v16  ;;  %v1571_v32 = vpop.f32.mrf.mxu0  ;;  %940 = vst.msk [vmem:[%s2430_s2 + $0xb0] sm:$0xf] %vm895_vm3, %v1486_v7  ;;  %v1489_v24 = vpack.c.bf16 %v2000_v1, %v2000_v1  ;;  %v1126_v36 = vmul.f32 %v1854_v8, %v1854_v8 }
 0x102   :  { %921 = vst.msk [vmem:[%s2430_s2 + $0x64] sm:$0xf] %vm895_vm3, %v1467_v23  ;;  %v1207_v37 = vsel %vm960_vm4, %v1119_v27, 0.0  ;;  %v1472_v38 = vpack.c.bf16 %v1571_v32, %v1571_v32  ;;  %v1124_v63 = vmul.f32 %v1571_v32, %v1571_v32  ;;  %v1020_v20 = vsel %vm960_vm4, %v1571_v32, 0.0 }
 0x103   :  { %v1013_v40 = vadd.f32 %v1012_v33, %v1011_v30  ;;  %v1208_v41 = vadd.f32 %v1207_v37, %v1206_v29  ;;  %v496_v43 = vpop.f32.mrf.mxu0  ;;  %v1487_v30 = vpack.c.bf16 %v2012_v11, %v2012_v11  ;;  %943 = vst.msk [vmem:[%s2430_s2 + $0xbc] sm:$0xf] %vm895_vm3, %v1489_v24  ;;  %v1492_v37 = vpack.c.bf16 %v2022_v22, %v2022_v22 }
 0x104   :  { %926 = vst.msk [vmem:[%s2430_s2 + $0x78] sm:$0xf] %vm895_vm3, %v1472_v38  ;;  %v1470_v49 = vpack.c.bf16 %v496_v43, %v496_v43  ;;  %v1122_v50 = vmul.f32 %v496_v43, %v496_v43  ;;  %v1016_v59 = vsel %vm960_vm4, %v496_v43, 0.0  ;;  %v1217_v33 = vsel %vm960_vm4, %v1124_v63, 0.0 }
 0x105   :  { %v1210_v54 = vadd.f32 %v1209_v47, %v1208_v41  ;;  %v1015_v56 = vadd.f32 %v1014_v48, %v1013_v40  ;;  %v1572_v57 = vpop.f32.mrf.mxu0  ;;  %941 = vst.msk [vmem:[%s2430_s2 + $0xb4] sm:$0xf] %vm895_vm3, %v1487_v30  ;;  %v2162_v41 = vpop.f32.mrf.mxu1  ;;  %v1127_v47 = vmul.f32 %v1880_v26, %v1880_v26  ;;  %946 = vst.msk [vmem:[%s2430_s2 + $0xc8] sm:$0xf] %vm895_vm3, %v1492_v37  ;;  %v1221_v8 = vsel %vm960_vm4, %v1126_v36, 0.0 }
 0x106   :  { %924 = vst.msk [vmem:[%s2430_s2 + $0x70] sm:$0xf] %vm895_vm3, %v1470_v49  ;;  %v1473_v61 = vpack.c.bf16 %v1572_v57, %v1572_v57  ;;  %v1213_v9 = vsel %vm960_vm4, %v1122_v50, 0.0  ;;  %v1125_v21 = vmul.f32 %v1572_v57, %v1572_v57  ;;  %v1022_v32 = vsel %vm960_vm4, %v1572_v57, 0.0 }
 0x107   :  { %v1017_v2 = vadd.f32 %v1016_v59, %v1015_v56  ;;  %v1212_v4 = vadd.f32 %v1211_v58, %v1210_v54  ;;  %v499_v5 = vpop.f32.mrf.mxu0  ;;  %v1490_v48 = vpack.c.bf16 %v2034_v31, %v2034_v31  ;;  %v1493_v54 = vpack.c.bf16 %v2044_v44, %v2044_v44  ;;  %v2192_v63 = vpop.f32.mrf.mxu1 }
 0x108   :  { %927 = vst.msk [vmem:[%s2430_s2 + $0x7c] sm:$0xf] %vm895_vm3, %v1473_v61  ;;  %v1471_v10 = vpack.c.bf16 %v499_v5, %v499_v5  ;;  %v1018_v12 = vsel %vm960_vm4, %v499_v5, 0.0  ;;  %v1123_v15 = vmul.f32 %v499_v5, %v499_v5  ;;  %v1219_v43 = vsel %vm960_vm4, %v1125_v21, 0.0 }
 0x109   :  { %v1214_v16 = vadd.f32 %v1213_v9, %v1212_v4  ;;  %v1019_v17 = vadd.f32 %v1018_v12, %v1017_v2  ;;  %v1128_v56 = vmul.f32 %v1844_v0, %v1844_v0  ;;  %v1026_v57 = vsel %vm960_vm4, %v1880_v26, 0.0  ;;  %944 = vst.msk [vmem:[%s2430_s2 + $0xc0] sm:$0xf] %vm895_vm3, %v1490_v48  ;;  %947 = vst.msk [vmem:[%s2430_s2 + $0xcc] sm:$0xf] %vm895_vm3, %v1493_v54  ;;  %v2222_v21 = vpop.f32.mrf.mxu1 }
 0x10a   :  { %925 = vst.msk [vmem:[%s2430_s2 + $0x74] sm:$0xf] %vm895_vm3, %v1471_v10  ;;  %v1215_v23 = vsel %vm960_vm4, %v1123_v15, 0.0  ;;  %v1491_v58 = vpack.c.bf16 %v2056_v55, %v2056_v55  ;;  %v1028_v26 = vsel %vm960_vm4, %v1844_v0, 0.0  ;;  %v1129_v2 = vmul.f32 %v1868_v18, %v1868_v18 }
 0x10b   :  { %v1021_v27 = vadd.f32 %v1020_v20, %v1019_v17  ;;  %v1216_v29 = vadd.f32 %v1215_v23, %v1214_v16  ;;  %v1223_v4 = vsel %vm960_vm4, %v1127_v47, 0.0  ;;  %v1496_v5 = vpack.c.bf16 %v2066_v3, %v2066_v3 }
 0x10c   :  { %945 = vst.msk [vmem:[%s2430_s2 + $0xc4] sm:$0xf] %vm895_vm3, %v1491_v58  ;;  %v1494_v10 = vpack.c.bf16 %v2078_v13, %v2078_v13  ;;  %v1225_v0 = vsel %vm960_vm4, %v1128_v56, 0.0  ;;  %v1030_v12 = vsel %vm960_vm4, %v1868_v18, 0.0  ;;  %v1130_v15 = vmul.f32 %v1902_v42, %v1902_v42 }
 0x10d   :  { %v1023_v38 = vadd.f32 %v1022_v32, %v1021_v27  ;;  %v1218_v40 = vadd.f32 %v1217_v33, %v1216_v29  ;;  %950 = vst.msk [vmem:[%s2430_s2 + $0xd8] sm:$0xf] %vm895_vm3, %v1496_v5  ;;  %v1497_v16 = vpack.c.bf16 %v2088_v28, %v2088_v28  ;;  %v1227_v18 = vsel %vm960_vm4, %v1129_v2, 0.0 }
 0x10e   :  { %948 = vst.msk [vmem:[%s2430_s2 + $0xd0] sm:$0xf] %vm895_vm3, %v1494_v10  ;;  %v1032_v23 = vsel %vm960_vm4, %v1902_v42, 0.0  ;;  %v1131_v24 = vmul.f32 %v1924_v60, %v1924_v60  ;;  %v1495_v27 = vpack.c.bf16 %v2100_v39, %v2100_v39  ;;  %v1500_v33 = vpack.c.bf16 %v2110_v51, %v2110_v51 }
 0x10f   :  { %v1220_v49 = vadd.f32 %v1219_v43, %v1218_v40  ;;  %v1025_v50 = vadd.f32 %v1024_v46, %v1023_v38  ;;  %951 = vst.msk [vmem:[%s2430_s2 + $0xdc] sm:$0xf] %vm895_vm3, %v1497_v16  ;;  %v1132_v32 = vmul.f32 %v1890_v35, %v1890_v35  ;;  %v1229_v42 = vsel %vm960_vm4, %v1130_v15, 0.0  ;;  %v2252_v43 = vpop.f32.mrf.mxu1 }
 0x110   :  { %v1034_v36 = vsel %vm960_vm4, %v1924_v60, 0.0  ;;  %949 = vst.msk [vmem:[%s2430_s2 + $0xd4] sm:$0xf] %vm895_vm3, %v1495_v27  ;;  %v1498_v37 = vpack.c.bf16 %v2122_v62, %v2122_v62  ;;  %954 = vst.msk [vmem:[%s2430_s2 + $0xe8] sm:$0xf] %vm895_vm3, %v1500_v33  ;;  %v1036_v60 = vsel %vm960_vm4, %v1890_v35, 0.0  ;;  %v1133_v46 = vmul.f32 %v1912_v52, %v1912_v52 }
 0x111   :  { %v1027_v59 = vadd.f32 %v1026_v57, %v1025_v50  ;;  %v1222_v61 = vadd.f32 %v1221_v8, %v1220_v49  ;;  %v1231_v47 = vsel %vm960_vm4, %v1131_v24, 0.0  ;;  %v1501_v48 = vpack.c.bf16 %v2136_v19, %v2136_v19 }
 0x112   :  { %952 = vst.msk [vmem:[%s2430_s2 + $0xe0] sm:$0xf] %vm895_vm3, %v1498_v37  ;;  %v1499_v54 = vpack.c.bf16 %v2162_v41, %v2162_v41  ;;  %v1233_v35 = vsel %vm960_vm4, %v1132_v32, 0.0  ;;  %v1038_v56 = vsel %vm960_vm4, %v1912_v52, 0.0  ;;  %v1134_v8 = vmul.f32 %v1946_v14, %v1946_v14 }
 0x113   :  { %v1029_v7 = vadd.f32 %v1028_v26, %v1027_v59  ;;  %v1224_v9 = vadd.f32 %v1223_v4, %v1222_v61  ;;  %955 = vst.msk [vmem:[%s2430_s2 + $0xec] sm:$0xf] %vm895_vm3, %v1501_v48  ;;  %v1504_v57 = vpack.c.bf16 %v2192_v63, %v2192_v63  ;;  %v2282_v61 = vpop.f32.mrf.mxu1  ;;  %v1235_v52 = vsel %vm960_vm4, %v1133_v46, 0.0 }
 0x114   :  { %953 = vst.msk [vmem:[%s2430_s2 + $0xe4] sm:$0xf] %vm895_vm3, %v1499_v54  ;;  %v1040_v26 = vsel %vm960_vm4, %v1946_v14, 0.0  ;;  %v1135_v2 = vmul.f32 %v1968_v34, %v1968_v34  ;;  %v1502_v4 = vpack.c.bf16 %v2222_v21, %v2222_v21  ;;  %v1136_v10 = vmul.f32 %v1934_v6, %v1934_v6 }
 0x115   :  { %v1226_v17 = vadd.f32 %v1225_v0, %v1224_v9  ;;  %v1031_v20 = vadd.f32 %v1030_v12, %v1029_v7  ;;  %958 = vst.msk [vmem:[%s2430_s2 + $0xf8] sm:$0xf] %vm895_vm3, %v1504_v57  ;;  %v1505_v9 = vpack.c.bf16 %v2252_v43, %v2252_v43  ;;  %v1237_v14 = vsel %vm960_vm4, %v1134_v8, 0.0 }
 0x116   :  { %v1042_v0 = vsel %vm960_vm4, %v1968_v34, 0.0  ;;  %956 = vst.msk [vmem:[%s2430_s2 + $0xf0] sm:$0xf] %vm895_vm3, %v1502_v4  ;;  %v1503_v12 = vpack.c.bf16 %v2282_v61, %v2282_v61  ;;  %v1137_v34 = vmul.f32 %v1956_v25, %v1956_v25  ;;  %v1241_v24 = vsel %vm960_vm4, %v1136_v10, 0.0 }
 0x117   :  { %v1033_v29 = vadd.f32 %v1032_v23, %v1031_v20  ;;  %v1228_v30 = vadd.f32 %v1227_v18, %v1226_v17  ;;  %959 = vst.msk [vmem:[%s2430_s2 + $0xfc] sm:$0xf] %vm895_vm3, %v1505_v9  ;;  %v1044_v17 = vsel %vm960_vm4, %v1934_v6, 0.0  ;;  %v1239_v20 = vsel %vm960_vm4, %v1135_v2, 0.0 }
 0x118   :  { %957 = vst.msk [vmem:[%s2430_s2 + $0xf4] sm:$0xf] %vm895_vm3, %v1503_v12  ;;  %v1046_v27 = vsel %vm960_vm4, %v1956_v25, 0.0  ;;  %v1138_v6 = vmul.f32 %v1990_v53, %v1990_v53  ;;  %v1243_v33 = vsel %vm960_vm4, %v1137_v34, 0.0  ;;  %v1048_v32 = vsel %vm960_vm4, %v1990_v53, 0.0  ;;  %s1665_s2 = smov [#allocation2]  }
 0x119   :  { %v1230_v38 = vadd.f32 %v1229_v42, %v1228_v30  ;;  %v1035_v40 = vadd.f32 %v1034_v36, %v1033_v29  ;;  %v1139_v42 = vmul.f32 %v2012_v11, %v2012_v11  ;;  %v1141_v53 = vmul.f32 %v2000_v1, %v2000_v1  ;;  %s1303_s5 = sshll.u32 %s1665_s2, 4  ;;  %s1304_s5 = int_to_ptr.vmem [resolvable:$true] %s1303_s5 }
 0x11a   :  { %v1245_v25 = vsel %vm960_vm4, %v1138_v6, 0.0  ;;  %v1058_v2 = vsel %vm960_vm4, %v2056_v55, 0.0  ;;  %v1062_v12 = vsel %vm960_vm4, %v2044_v44, 0.0  ;;  %v1147_v34 = vmul.f32 %v2100_v39, %v2100_v39  ;;  %s1642_s6 = scalar_lea.vmem %s1304_s5, 32  ;;  %p1647_p1 = scmp.lt.s32.totalorder %s1304_s5, %s1304_s5 }
 0x11b   :  { %v1037_v49 = vadd.f32 %v1036_v60, %v1035_v40  ;;  %v1232_v50 = vadd.f32 %v1231_v47, %v1230_v38  ;;  %v1140_v38 = vmul.f32 %v1978_v45, %v1978_v45  ;;  %v1050_v40 = vsel %vm960_vm4, %v2012_v11, 0.0  ;;  %p1643_p0 = scmp.ne.s32.totalorder %s1304_s5, %s1642_s6  ;;  %p1648_p2 = scmp.lt.s32.totalorder %s1642_s6, %s1642_s6 }
 0x11c   :  { %v1052_v47 = vsel %vm960_vm4, %v1978_v45, 0.0  ;;  %v1247_v48 = vsel %vm960_vm4, %v1139_v42, 0.0  ;;  %v1142_v11 = vmul.f32 %v2034_v31, %v2034_v31  ;;  %v1251_v57 = vsel %vm960_vm4, %v1141_v53, 0.0 }
 0x11d   :  { %v1234_v58 = vadd.f32 %v1233_v35, %v1232_v50  ;;  %v1039_v59 = vadd.f32 %v1038_v56, %v1037_v49  ;;  %v1249_v54 = vsel %vm960_vm4, %v1140_v38, 0.0  ;;  %v1054_v35 = vsel %vm960_vm4, %v2000_v1, 0.0  ;;  %p1649_p3 = por %p1648_p2, %p1647_p1 }
 0x11e   :  { %v1056_v45 = vsel %vm960_vm4, %v2034_v31, 0.0  ;;  %v1253_v1 = vsel %vm960_vm4, %v1142_v11, 0.0  ;;  %v1145_v31 = vmul.f32 %v2044_v44, %v2044_v44  ;;  %v1074_v53 = vsel %vm960_vm4, %v2162_v41, 0.0 }
 0x11f   :  { %v1041_v5 = vadd.f32 %v1040_v26, %v1039_v59  ;;  %v1236_v7 = vadd.f32 %v1235_v52, %v1234_v58  ;;  %v1143_v58 = vmul.f32 %v2056_v55, %v2056_v55  ;;  %v1144_v26 = vmul.f32 %v2022_v22, %v2022_v22  ;;  %p1650_p4 = pnand %p1649_p3, %p1643_p0 }
 0x120   :  { %v1146_v55 = vmul.f32 %v2078_v13, %v2078_v13 }
 0x121   :  { %v1238_v15 = vadd.f32 %v1237_v14, %v1236_v7  ;;  %v1043_v16 = vadd.f32 %v1042_v0, %v1041_v5  ;;  %v1060_v7 = vsel %vm960_vm4, %v2022_v22, 0.0  ;;  %v1255_v9 = vsel %vm960_vm4, %v1143_v58, 0.0 }
 0x122   :  { %v1257_v0 = vsel %vm960_vm4, %v1144_v26, 0.0  ;;  %v1064_v22 = vsel %vm960_vm4, %v2078_v13, 0.0  ;;  %v1261_v44 = vsel %vm960_vm4, %v1146_v55, 0.0  ;;  %v1149_v13 = vmul.f32 %v2088_v28, %v2088_v28 }
 0x123   :  { %v1045_v18 = vadd.f32 %v1044_v17, %v1043_v16  ;;  %v1240_v23 = vadd.f32 %v1239_v20, %v1238_v15  ;;  %v1259_v17 = vsel %vm960_vm4, %v1145_v31, 0.0 }
 0x125   :  { %v1242_v29 = vadd.f32 %v1241_v24, %v1240_v23  ;;  %v1047_v30 = vadd.f32 %v1046_v27, %v1045_v18  ;;  %v1148_v23 = vmul.f32 %v2066_v3, %v2066_v3  ;;  %v1066_v24 = vsel %vm960_vm4, %v2100_v39, 0.0 }
 0x126   :  { %v1150_v39 = vmul.f32 %v2122_v62, %v2122_v62 }
 0x127   :  { %v1049_v36 = vadd.f32 %v1048_v32, %v1047_v30  ;;  %v1244_v37 = vadd.f32 %v1243_v33, %v1242_v29  ;;  %v1068_v29 = vsel %vm960_vm4, %v2066_v3, 0.0  ;;  %v1263_v30 = vsel %vm960_vm4, %v1147_v34, 0.0 }
 0x128   :  { %v1265_v42 = vsel %vm960_vm4, %v1148_v23, 0.0  ;;  %v1072_v3 = vsel %vm960_vm4, %v2122_v62, 0.0  ;;  %v1153_v62 = vmul.f32 %v2136_v19, %v2136_v19 }
 0x129   :  { %v1246_v60 = vadd.f32 %v1245_v25, %v1244_v37  ;;  %v1051_v46 = vadd.f32 %v1050_v40, %v1049_v36  ;;  %v1070_v36 = vsel %vm960_vm4, %v2088_v28, 0.0  ;;  %v1267_v25 = vsel %vm960_vm4, %v1149_v13, 0.0 }
 0x12a   :  { %v1151_v40 = vmul.f32 %v2162_v41, %v2162_v41  ;;  %v1269_v28 = vsel %vm960_vm4, %v1150_v39, 0.0  ;;  %v1154_v41 = vmul.f32 %v2222_v21, %v2222_v21  ;;  %v1275_v58 = vsel %vm960_vm4, %v1153_v62, 0.0 }
 0x12b   :  { %v1053_v49 = vadd.f32 %v1052_v47, %v1051_v46  ;;  %v1248_v50 = vadd.f32 %v1247_v48, %v1246_v60  ;;  %v1152_v47 = vmul.f32 %v2110_v51, %v2110_v51 }
 0x12d   :  { %v1250_v56 = vadd.f32 %v1249_v54, %v1248_v50  ;;  %v1055_v8 = vadd.f32 %v1054_v35, %v1053_v49  ;;  %v1076_v50 = vsel %vm960_vm4, %v2110_v51, 0.0  ;;  %v1271_v54 = vsel %vm960_vm4, %v1151_v40, 0.0 }
 0x12e   :  { %v1080_v51 = vsel %vm960_vm4, %v2222_v21, 0.0  ;;  %v1157_v21 = vmul.f32 %v2252_v43, %v2252_v43 }
 0x12f   :  { %v1057_v59 = vadd.f32 %v1056_v45, %v1055_v8  ;;  %v1252_v52 = vadd.f32 %v1251_v57, %v1250_v56  ;;  %v1273_v56 = vsel %vm960_vm4, %v1152_v47, 0.0  ;;  %v1078_v8 = vsel %vm960_vm4, %v2136_v19, 0.0 }
 0x130   :  { %v1277_v19 = vsel %vm960_vm4, %v1154_v41, 0.0 }
 0x131   :  { %v1254_v4 = vadd.f32 %v1253_v1, %v1252_v52  ;;  %v1059_v5 = vadd.f32 %v1058_v2, %v1057_v59  ;;  %v1155_v59 = vmul.f32 %v2282_v61, %v2282_v61  ;;  %v1156_v1 = vmul.f32 %v2192_v63, %v2192_v63 }
 0x132   :  { %v1082_v2 = vsel %vm960_vm4, %v2282_v61, 0.0  ;;  %v1283_v61 = vsel %vm960_vm4, %v1157_v21, 0.0 }
 0x133   :  { %v1061_v10 = vadd.f32 %v1060_v7, %v1059_v5  ;;  %v1256_v14 = vadd.f32 %v1255_v9, %v1254_v4  ;;  %v1084_v7 = vsel %vm960_vm4, %v2192_v63, 0.0  ;;  %v1279_v31 = vsel %vm960_vm4, %v1155_v59, 0.0 }
 0x135   :  { %v1258_v15 = vadd.f32 %v1257_v0, %v1256_v14  ;;  %v1063_v16 = vadd.f32 %v1062_v12, %v1061_v10  ;;  %v1281_v14 = vsel %vm960_vm4, %v1156_v1, 0.0  ;;  %v1086_v0 = vsel %vm960_vm4, %v2252_v43, 0.0 }
 0x137   :  { %v1065_v20 = vadd.f32 %v1064_v22, %v1063_v16  ;;  %v1260_v18 = vadd.f32 %v1259_v17, %v1258_v15 }
 0x139   :  { %v1262_v27 = vadd.f32 %v1261_v44, %v1260_v18  ;;  %v1067_v6 = vadd.f32 %v1066_v24, %v1065_v20 }
 0x13b   :  { %v1069_v33 = vadd.f32 %v1068_v29, %v1067_v6  ;;  %v1264_v32 = vadd.f32 %v1263_v30, %v1262_v27 }
 0x13d   :  { %v1266_v37 = vadd.f32 %v1265_v42, %v1264_v32  ;;  %v1071_v38 = vadd.f32 %v1070_v36, %v1069_v33 }
 0x13f   :  { %v1073_v60 = vadd.f32 %v1072_v3, %v1071_v38  ;;  %v1268_v46 = vadd.f32 %v1267_v25, %v1266_v37 }
 0x141   :  { %v1270_v48 = vadd.f32 %v1269_v28, %v1268_v46  ;;  %v1075_v49 = vadd.f32 %v1074_v53, %v1073_v60 }
 0x143   :  { %v1077_v35 = vadd.f32 %v1076_v50, %v1075_v49  ;;  %v1272_v11 = vadd.f32 %v1271_v54, %v1270_v48 }
 0x145   :  { %v1274_v57 = vadd.f32 %v1273_v56, %v1272_v11  ;;  %v1079_v45 = vadd.f32 %v1078_v8, %v1077_v35 }
 0x147   :  { %v1081_v52 = vadd.f32 %v1080_v51, %v1079_v45  ;;  %v1276_v26 = vadd.f32 %v1275_v58, %v1274_v57 }
 0x149   :  { %v1278_v4 = vadd.f32 %v1277_v19, %v1276_v26  ;;  %v1083_v5 = vadd.f32 %v1082_v2, %v1081_v52 }
 0x14b   :  { %v1085_v9 = vadd.f32 %v1084_v7, %v1083_v5  ;;  %v1280_v10 = vadd.f32 %v1279_v31, %v1278_v4 }
 0x14d   :  { %v1087_v12 = vadd.f32 %v1086_v0, %v1085_v9  ;;  %v1282_v55 = vadd.f32 %v1281_v14, %v1280_v10 }
 0x14f   :  { %v1088_v15 = vrot.slane %v1087_v12, 4  ;;  %v1284_v16 = vadd.f32 %v1283_v61, %v1282_v55 }
 0x151   :  { %v1089_v17 = vadd.f32 %v1088_v15, %v1087_v12  ;;  %v1285_v63 = vrot.slane %v1284_v16, 4 }
 0x153   :  { %v1090_v22 = vrot.slane %v1089_v17, 2  ;;  %v1286_v34 = vadd.f32 %v1285_v63, %v1284_v16 }
 0x155   :  { %v1091_v20 = vadd.f32 %v1090_v22, %v1089_v17  ;;  %v1287_v18 = vrot.slane %v1286_v34, 2 }
 0x157   :  { %v1092_v23 = vrot.slane %v1091_v20, 1  ;;  %v1288_v44 = vadd.f32 %v1287_v18, %v1286_v34 }
 0x159   :  { %v1289_v24 = vrot.slane %v1288_v44, 1  ;;  %v1093_v27 = vadd.f32 %v1092_v23, %v1091_v20 }
 0x15b   :  { %v1290_v43 = vadd.f32 %v1289_v24, %v1288_v44 }
 0x15d   :  { %v1292_v6 = vsel %vm1291_vm5, %v1093_v27, %v1290_v43 }
 0x15e   :  { %1294 = vst.msk [vmem:[#allocation2] sm:$0x3] %vm1293_vm6, %v1292_v6 }
 0x15f   :  { %1653 = shalt.err (!%p1650_p4)
}
 0x160   :  { %1306 = dma.vmem_to_hbm [thread:$0]  %s1304_s5, 32, %s2431_s3, [#allocation3]  }
 0x161   :  { %1662 = dma.done.wait [#allocation3], 32  }
 0x162   :  { %1663 = vsyncadd [#allocation3], 4294967264 }
 0x163   :  { %1312 = vsyncpa [#allocation3], 1 }

</bundles_post_ra>
